<compile_context>
chip_gen: v7x
topology: tpu7x:2x2x1
jax: 0.10.0
libtpu: 0.0.40
codegen_flags: <defaults>
</compile_context>

<pallas_src>
import jax
import jax.numpy as jnp
from jax.experimental import pallas as pl
from jax.experimental.pallas import tpu as pltpu

HIDDEN = 64   # fixed by the module definition (nn.LSTM(num_feature, 64))


def lstm_fc_kernel(x_ref, wih_ref, whh_ref, b_ref, wfc_ref, bfc_ref, out_ref):
    B, T, F = x_ref.shape
    H = HIDDEN

    # ---- hoisted input projection: one MXU matmul for all timesteps ----
    # Batch-first layout kept; (B, T, F) -> (B*T, F) is a pure reshape
    # (rows ordered b*T + t), no transpose anywhere.
    x_flat = x_ref[...].reshape(B * T, F)
    gx = (jnp.dot(x_flat, wih_ref[...], preferred_element_type=jnp.float32)
          + b_ref[...])                               # (B*T, 4H)
    gx = gx.reshape(B, T, 4 * H)                      # per-step slab = gx[:, t, :]

    whh = whh_ref[...]                                # (H, 4H) = (64, 256)

    h = jnp.zeros((B, H), jnp.float32)
    c = jnp.zeros((B, H), jnp.float32)

    # Fully unrolled static recurrence (T small/static); all slice indices are
    # compile-time constants. Gate order is PyTorch's (i | f | g | o).
    for t in range(T):
        gates = gx[:, t, :] + jnp.dot(h, whh,
                                      preferred_element_type=jnp.float32)  # (B, 4H)
        i_g = jax.nn.sigmoid(gates[:, 0 * H:1 * H])
        f_g = jax.nn.sigmoid(gates[:, 1 * H:2 * H])
        g_g = jnp.tanh(gates[:, 2 * H:3 * H])
        o_g = jax.nn.sigmoid(gates[:, 3 * H:4 * H])
        c = f_g * c + i_g * g_g
        h = o_g * jnp.tanh(c)

    # fc(hidden): (B, H) @ (H, F) + (1, F)
    y = jnp.dot(h, wfc_ref[...], preferred_element_type=jnp.float32) + bfc_ref[...]
    out_ref[0] = y.astype(out_ref.dtype)


def neural_network_forward(x_btf, params):
    """x_btf: (B, T, F) batch-first, like the PyTorch module. Returns (1, B, F)."""
    B, T, F = x_btf.shape
    vmem = pl.BlockSpec(memory_space=pltpu.MemorySpace.VMEM)
    out = pl.pallas_call(
        lstm_fc_kernel,
        out_shape=jax.ShapeDtypeStruct((1, B, F), jnp.float32),
        in_specs=[vmem] * 6,
        out_specs=vmem,
        compiler_params=pltpu.CompilerParams(
            vmem_limit_bytes=32 * 1024 * 1024),
    )(x_btf, params["wih"], params["whh"], params["b"],
      params["wfc"], params["bfc"])
    return out


def make_params(key, num_feature):
    """Deterministic synthetic parameters with the module's shapes (+ kernel packs)."""
    H = HIDDEN
    k = 1.0 / jnp.sqrt(jnp.float32(H))
    keys = jax.random.split(key, 6)
    w_ih = jax.random.uniform(keys[0], (4 * H, num_feature), jnp.float32, -k, k)
    w_hh = jax.random.uniform(keys[1], (4 * H, H), jnp.float32, -k, k)
    b_ih = jax.random.uniform(keys[2], (4 * H,), jnp.float32, -k, k)
    b_hh = jax.random.uniform(keys[3], (4 * H,), jnp.float32, -k, k)
    w_fc = jax.random.uniform(keys[4], (num_feature, H), jnp.float32, -k, k)
    b_fc = jax.random.uniform(keys[5], (num_feature,), jnp.float32, -k, k)

    return {
        # kernel-layout packs (plain transposes; natural i|f|g|o gate packing)
        "wih": jnp.transpose(w_ih),              # (F, 4H)
        "whh": jnp.transpose(w_hh),              # (H, 4H)
        "b": (b_ih + b_hh)[None, :],             # (1, 4H)
        "wfc": jnp.transpose(w_fc),              # (H, F)
        "bfc": b_fc[None, :],                    # (1, F)
        # raw copies for the pure-JAX reference
        "_w_ih": w_ih, "_w_hh": w_hh, "_b_ih": b_ih, "_b_hh": b_hh,
        "_w_fc": w_fc, "_b_fc": b_fc,
    }


def reference_forward(x_btf, params):
    """Pure-JAX reference matching PyTorch nn.LSTM + nn.Linear semantics."""
    B, T, F = x_btf.shape
    H = HIDDEN
    w_ih, w_hh = params["_w_ih"], params["_w_hh"]
    b = params["_b_ih"] + params["_b_hh"]

    def step(carry, x_t):
        h, c = carry
        gates = x_t @ w_ih.T + h @ w_hh.T + b
        i = jax.nn.sigmoid(gates[:, 0:H])
        f = jax.nn.sigmoid(gates[:, H:2 * H])
        g = jnp.tanh(gates[:, 2 * H:3 * H])
        o = jax.nn.sigmoid(gates[:, 3 * H:4 * H])
        c = f * c + i * g
        h = o * jnp.tanh(c)
        return (h, c), None

    h0 = jnp.zeros((B, H), jnp.float32)
    c0 = jnp.zeros((B, H), jnp.float32)
    (h_T, _), _ = jax.lax.scan(step, (h0, c0), jnp.transpose(x_btf, (1, 0, 2)))
    y = h_T @ params["_w_fc"].T + params["_b_fc"]
    return y[None, :, :]  # (1, B, F), matching fc(hidden) with num_layers=1


if __name__ == "__main__":
    num_feature = 4
    B, T = 2, 8

    key = jax.random.PRNGKey(0)
    k_x, k_p = jax.random.split(key)
    x = jax.random.normal(k_x, (B, T, num_feature), jnp.float32)
    params = make_params(k_p, num_feature)

    y = neural_network_forward(x, params)
    y = jax.block_until_ready(y)

    y_ref = reference_forward(x, params)
    assert y.shape == (1, B, num_feature)
    assert jnp.allclose(y, y_ref, atol=1e-4, rtol=1e-4), (
        f"max abs err {jnp.max(jnp.abs(y - y_ref))}")

    print("KERNEL_OK")
</pallas_src>

<mosaic_0001>
module attributes {stable_mosaic.version = 11 : i64} {
  func.func @lstm_fc_kernel(%arg0: memref<2x8x4xf32, #tpu.memory_space<vmem>>, %arg1: memref<4x256xf32, #tpu.memory_space<vmem>>, %arg2: memref<64x256xf32, #tpu.memory_space<vmem>>, %arg3: memref<1x256xf32, #tpu.memory_space<vmem>>, %arg4: memref<64x4xf32, #tpu.memory_space<vmem>>, %arg5: memref<1x4xf32, #tpu.memory_space<vmem>>, %arg6: memref<1x2x4xf32, #tpu.memory_space<vmem>>) attributes {dimension_semantics = [], scalar_prefetch = 0 : i64, scratch_operands = 0 : i64, tpu.core_type = #tpu.core_type<tc>} {
    %c0 = arith.constant 0 : index
    %c0_0 = arith.constant 0 : index
    %c0_1 = arith.constant 0 : index
    %0 = vector.load %arg0[%c0, %c0_0, %c0_1] : memref<2x8x4xf32, #tpu.memory_space<vmem>>, vector<2x8x4xf32>
    %1 = vector.shape_cast %0 : vector<2x8x4xf32> to vector<16x4xf32>
    %c0_2 = arith.constant 0 : index
    %c0_3 = arith.constant 0 : index
    %2 = vector.load %arg1[%c0_2, %c0_3] : memref<4x256xf32, #tpu.memory_space<vmem>>, vector<4x256xf32>
    %cst = arith.constant dense<0.000000e+00> : vector<16x256xf32>
    %3 = tpu.matmul %1, %2, %cst {dimension_numbers = #tpu.dot_dimension_numbers<[1], [0], [0], [1], [0, 0, 1, 1], [], []>} : vector<16x4xf32>, vector<4x256xf32>, vector<16x256xf32> -> vector<16x256xf32>
    %c0_4 = arith.constant 0 : index
    %c0_5 = arith.constant 0 : index
    %4 = vector.load %arg3[%c0_4, %c0_5] : memref<1x256xf32, #tpu.memory_space<vmem>>, vector<1x256xf32>
    %5 = vector.broadcast %4 : vector<1x256xf32> to vector<16x256xf32>
    %6 = arith.addf %3, %5 : vector<16x256xf32>
    %7 = vector.shape_cast %6 : vector<16x256xf32> to vector<2x8x256xf32>
    %c0_6 = arith.constant 0 : index
    %c0_7 = arith.constant 0 : index
    %8 = vector.load %arg2[%c0_6, %c0_7] : memref<64x256xf32, #tpu.memory_space<vmem>>, vector<64x256xf32>
    %cst_8 = arith.constant 0.000000e+00 : f32
    %9 = vector.broadcast %cst_8 : f32 to vector<2x64xf32>
    %cst_9 = arith.constant 0.000000e+00 : f32
    %10 = vector.broadcast %cst_9 : f32 to vector<2x64xf32>
    %11 = vector.extract_strided_slice %7 {offsets = [0, 0, 0], sizes = [2, 1, 256], strides = [1, 1, 1]} : vector<2x8x256xf32> to vector<2x1x256xf32>
    %12 = vector.shape_cast %11 : vector<2x1x256xf32> to vector<2x256xf32>
    %cst_10 = arith.constant dense<0.000000e+00> : vector<2x256xf32>
    %13 = tpu.matmul %9, %8, %cst_10 {dimension_numbers = #tpu.dot_dimension_numbers<[1], [0], [0], [1], [0, 0, 1, 1], [], []>} : vector<2x64xf32>, vector<64x256xf32>, vector<2x256xf32> -> vector<2x256xf32>
    %14 = arith.addf %12, %13 : vector<2x256xf32>
    %15 = vector.extract_strided_slice %14 {offsets = [0, 0], sizes = [2, 64], strides = [1, 1]} : vector<2x256xf32> to vector<2x64xf32>
    %16 = arith.negf %15 : vector<2x64xf32>
    %17 = math.exp %16 : vector<2x64xf32>
    %cst_11 = arith.constant 1.000000e+00 : f32
    %18 = vector.broadcast %cst_11 : f32 to vector<2x64xf32>
    %19 = arith.addf %18, %17 : vector<2x64xf32>
    %20 = arith.divf %18, %19 : vector<2x64xf32>
    %21 = vector.extract_strided_slice %14 {offsets = [0, 64], sizes = [2, 64], strides = [1, 1]} : vector<2x256xf32> to vector<2x64xf32>
    %22 = arith.negf %21 : vector<2x64xf32>
    %23 = math.exp %22 : vector<2x64xf32>
    %cst_12 = arith.constant 1.000000e+00 : f32
    %24 = vector.broadcast %cst_12 : f32 to vector<2x64xf32>
    %25 = arith.addf %24, %23 : vector<2x64xf32>
    %26 = arith.divf %24, %25 : vector<2x64xf32>
    %27 = vector.extract_strided_slice %14 {offsets = [0, 128], sizes = [2, 64], strides = [1, 1]} : vector<2x256xf32> to vector<2x64xf32>
    %28 = math.tanh %27 : vector<2x64xf32>
    %29 = vector.extract_strided_slice %14 {offsets = [0, 192], sizes = [2, 64], strides = [1, 1]} : vector<2x256xf32> to vector<2x64xf32>
    %30 = arith.negf %29 : vector<2x64xf32>
    %31 = math.exp %30 : vector<2x64xf32>
    %cst_13 = arith.constant 1.000000e+00 : f32
    %32 = vector.broadcast %cst_13 : f32 to vector<2x64xf32>
    %33 = arith.addf %32, %31 : vector<2x64xf32>
    %34 = arith.divf %32, %33 : vector<2x64xf32>
    %35 = arith.mulf %26, %10 : vector<2x64xf32>
    %36 = arith.mulf %20, %28 : vector<2x64xf32>
    %37 = arith.addf %35, %36 : vector<2x64xf32>
    %38 = math.tanh %37 : vector<2x64xf32>
    %39 = arith.mulf %34, %38 : vector<2x64xf32>
    %40 = vector.extract_strided_slice %7 {offsets = [0, 1, 0], sizes = [2, 1, 256], strides = [1, 1, 1]} : vector<2x8x256xf32> to vector<2x1x256xf32>
    %41 = vector.shape_cast %40 : vector<2x1x256xf32> to vector<2x256xf32>
    %cst_14 = arith.constant dense<0.000000e+00> : vector<2x256xf32>
    %42 = tpu.matmul %39, %8, %cst_14 {dimension_numbers = #tpu.dot_dimension_numbers<[1], [0], [0], [1], [0, 0, 1, 1], [], []>} : vector<2x64xf32>, vector<64x256xf32>, vector<2x256xf32> -> vector<2x256xf32>
    %43 = arith.addf %41, %42 : vector<2x256xf32>
    %44 = vector.extract_strided_slice %43 {offsets = [0, 0], sizes = [2, 64], strides = [1, 1]} : vector<2x256xf32> to vector<2x64xf32>
    %45 = arith.negf %44 : vector<2x64xf32>
    %46 = math.exp %45 : vector<2x64xf32>
    %cst_15 = arith.constant 1.000000e+00 : f32
    %47 = vector.broadcast %cst_15 : f32 to vector<2x64xf32>
    %48 = arith.addf %47, %46 : vector<2x64xf32>
    %49 = arith.divf %47, %48 : vector<2x64xf32>
    %50 = vector.extract_strided_slice %43 {offsets = [0, 64], sizes = [2, 64], strides = [1, 1]} : vector<2x256xf32> to vector<2x64xf32>
    %51 = arith.negf %50 : vector<2x64xf32>
    %52 = math.exp %51 : vector<2x64xf32>
    %cst_16 = arith.constant 1.000000e+00 : f32
    %53 = vector.broadcast %cst_16 : f32 to vector<2x64xf32>
    %54 = arith.addf %53, %52 : vector<2x64xf32>
    %55 = arith.divf %53, %54 : vector<2x64xf32>
    %56 = vector.extract_strided_slice %43 {offsets = [0, 128], sizes = [2, 64], strides = [1, 1]} : vector<2x256xf32> to vector<2x64xf32>
    %57 = math.tanh %56 : vector<2x64xf32>
    %58 = vector.extract_strided_slice %43 {offsets = [0, 192], sizes = [2, 64], strides = [1, 1]} : vector<2x256xf32> to vector<2x64xf32>
    %59 = arith.negf %58 : vector<2x64xf32>
    %60 = math.exp %59 : vector<2x64xf32>
    %cst_17 = arith.constant 1.000000e+00 : f32
    %61 = vector.broadcast %cst_17 : f32 to vector<2x64xf32>
    %62 = arith.addf %61, %60 : vector<2x64xf32>
    %63 = arith.divf %61, %62 : vector<2x64xf32>
    %64 = arith.mulf %55, %37 : vector<2x64xf32>
    %65 = arith.mulf %49, %57 : vector<2x64xf32>
    %66 = arith.addf %64, %65 : vector<2x64xf32>
    %67 = math.tanh %66 : vector<2x64xf32>
    %68 = arith.mulf %63, %67 : vector<2x64xf32>
    %69 = vector.extract_strided_slice %7 {offsets = [0, 2, 0], sizes = [2, 1, 256], strides = [1, 1, 1]} : vector<2x8x256xf32> to vector<2x1x256xf32>
    %70 = vector.shape_cast %69 : vector<2x1x256xf32> to vector<2x256xf32>
    %cst_18 = arith.constant dense<0.000000e+00> : vector<2x256xf32>
    %71 = tpu.matmul %68, %8, %cst_18 {dimension_numbers = #tpu.dot_dimension_numbers<[1], [0], [0], [1], [0, 0, 1, 1], [], []>} : vector<2x64xf32>, vector<64x256xf32>, vector<2x256xf32> -> vector<2x256xf32>
    %72 = arith.addf %70, %71 : vector<2x256xf32>
    %73 = vector.extract_strided_slice %72 {offsets = [0, 0], sizes = [2, 64], strides = [1, 1]} : vector<2x256xf32> to vector<2x64xf32>
    %74 = arith.negf %73 : vector<2x64xf32>
    %75 = math.exp %74 : vector<2x64xf32>
    %cst_19 = arith.constant 1.000000e+00 : f32
    %76 = vector.broadcast %cst_19 : f32 to vector<2x64xf32>
    %77 = arith.addf %76, %75 : vector<2x64xf32>
    %78 = arith.divf %76, %77 : vector<2x64xf32>
    %79 = vector.extract_strided_slice %72 {offsets = [0, 64], sizes = [2, 64], strides = [1, 1]} : vector<2x256xf32> to vector<2x64xf32>
    %80 = arith.negf %79 : vector<2x64xf32>
    %81 = math.exp %80 : vector<2x64xf32>
    %cst_20 = arith.constant 1.000000e+00 : f32
    %82 = vector.broadcast %cst_20 : f32 to vector<2x64xf32>
    %83 = arith.addf %82, %81 : vector<2x64xf32>
    %84 = arith.divf %82, %83 : vector<2x64xf32>
    %85 = vector.extract_strided_slice %72 {offsets = [0, 128], sizes = [2, 64], strides = [1, 1]} : vector<2x256xf32> to vector<2x64xf32>
    %86 = math.tanh %85 : vector<2x64xf32>
    %87 = vector.extract_strided_slice %72 {offsets = [0, 192], sizes = [2, 64], strides = [1, 1]} : vector<2x256xf32> to vector<2x64xf32>
    %88 = arith.negf %87 : vector<2x64xf32>
    %89 = math.exp %88 : vector<2x64xf32>
    %cst_21 = arith.constant 1.000000e+00 : f32
    %90 = vector.broadcast %cst_21 : f32 to vector<2x64xf32>
    %91 = arith.addf %90, %89 : vector<2x64xf32>
    %92 = arith.divf %90, %91 : vector<2x64xf32>
    %93 = arith.mulf %84, %66 : vector<2x64xf32>
    %94 = arith.mulf %78, %86 : vector<2x64xf32>
    %95 = arith.addf %93, %94 : vector<2x64xf32>
    %96 = math.tanh %95 : vector<2x64xf32>
    %97 = arith.mulf %92, %96 : vector<2x64xf32>
    %98 = vector.extract_strided_slice %7 {offsets = [0, 3, 0], sizes = [2, 1, 256], strides = [1, 1, 1]} : vector<2x8x256xf32> to vector<2x1x256xf32>
    %99 = vector.shape_cast %98 : vector<2x1x256xf32> to vector<2x256xf32>
    %cst_22 = arith.constant dense<0.000000e+00> : vector<2x256xf32>
    %100 = tpu.matmul %97, %8, %cst_22 {dimension_numbers = #tpu.dot_dimension_numbers<[1], [0], [0], [1], [0, 0, 1, 1], [], []>} : vector<2x64xf32>, vector<64x256xf32>, vector<2x256xf32> -> vector<2x256xf32>
    %101 = arith.addf %99, %100 : vector<2x256xf32>
    %102 = vector.extract_strided_slice %101 {offsets = [0, 0], sizes = [2, 64], strides = [1, 1]} : vector<2x256xf32> to vector<2x64xf32>
    %103 = arith.negf %102 : vector<2x64xf32>
    %104 = math.exp %103 : vector<2x64xf32>
    %cst_23 = arith.constant 1.000000e+00 : f32
    %105 = vector.broadcast %cst_23 : f32 to vector<2x64xf32>
    %106 = arith.addf %105, %104 : vector<2x64xf32>
    %107 = arith.divf %105, %106 : vector<2x64xf32>
    %108 = vector.extract_strided_slice %101 {offsets = [0, 64], sizes = [2, 64], strides = [1, 1]} : vector<2x256xf32> to vector<2x64xf32>
    %109 = arith.negf %108 : vector<2x64xf32>
    %110 = math.exp %109 : vector<2x64xf32>
    %cst_24 = arith.constant 1.000000e+00 : f32
    %111 = vector.broadcast %cst_24 : f32 to vector<2x64xf32>
    %112 = arith.addf %111, %110 : vector<2x64xf32>
    %113 = arith.divf %111, %112 : vector<2x64xf32>
    %114 = vector.extract_strided_slice %101 {offsets = [0, 128], sizes = [2, 64], strides = [1, 1]} : vector<2x256xf32> to vector<2x64xf32>
    %115 = math.tanh %114 : vector<2x64xf32>
    %116 = vector.extract_strided_slice %101 {offsets = [0, 192], sizes = [2, 64], strides = [1, 1]} : vector<2x256xf32> to vector<2x64xf32>
    %117 = arith.negf %116 : vector<2x64xf32>
    %118 = math.exp %117 : vector<2x64xf32>
    %cst_25 = arith.constant 1.000000e+00 : f32
    %119 = vector.broadcast %cst_25 : f32 to vector<2x64xf32>
    %120 = arith.addf %119, %118 : vector<2x64xf32>
    %121 = arith.divf %119, %120 : vector<2x64xf32>
    %122 = arith.mulf %113, %95 : vector<2x64xf32>
    %123 = arith.mulf %107, %115 : vector<2x64xf32>
    %124 = arith.addf %122, %123 : vector<2x64xf32>
    %125 = math.tanh %124 : vector<2x64xf32>
    %126 = arith.mulf %121, %125 : vector<2x64xf32>
    %127 = vector.extract_strided_slice %7 {offsets = [0, 4, 0], sizes = [2, 1, 256], strides = [1, 1, 1]} : vector<2x8x256xf32> to vector<2x1x256xf32>
    %128 = vector.shape_cast %127 : vector<2x1x256xf32> to vector<2x256xf32>
    %cst_26 = arith.constant dense<0.000000e+00> : vector<2x256xf32>
    %129 = tpu.matmul %126, %8, %cst_26 {dimension_numbers = #tpu.dot_dimension_numbers<[1], [0], [0], [1], [0, 0, 1, 1], [], []>} : vector<2x64xf32>, vector<64x256xf32>, vector<2x256xf32> -> vector<2x256xf32>
    %130 = arith.addf %128, %129 : vector<2x256xf32>
    %131 = vector.extract_strided_slice %130 {offsets = [0, 0], sizes = [2, 64], strides = [1, 1]} : vector<2x256xf32> to vector<2x64xf32>
    %132 = arith.negf %131 : vector<2x64xf32>
    %133 = math.exp %132 : vector<2x64xf32>
    %cst_27 = arith.constant 1.000000e+00 : f32
    %134 = vector.broadcast %cst_27 : f32 to vector<2x64xf32>
    %135 = arith.addf %134, %133 : vector<2x64xf32>
    %136 = arith.divf %134, %135 : vector<2x64xf32>
    %137 = vector.extract_strided_slice %130 {offsets = [0, 64], sizes = [2, 64], strides = [1, 1]} : vector<2x256xf32> to vector<2x64xf32>
    %138 = arith.negf %137 : vector<2x64xf32>
    %139 = math.exp %138 : vector<2x64xf32>
    %cst_28 = arith.constant 1.000000e+00 : f32
    %140 = vector.broadcast %cst_28 : f32 to vector<2x64xf32>
    %141 = arith.addf %140, %139 : vector<2x64xf32>
    %142 = arith.divf %140, %141 : vector<2x64xf32>
    %143 = vector.extract_strided_slice %130 {offsets = [0, 128], sizes = [2, 64], strides = [1, 1]} : vector<2x256xf32> to vector<2x64xf32>
    %144 = math.tanh %143 : vector<2x64xf32>
    %145 = vector.extract_strided_slice %130 {offsets = [0, 192], sizes = [2, 64], strides = [1, 1]} : vector<2x256xf32> to vector<2x64xf32>
    %146 = arith.negf %145 : vector<2x64xf32>
    %147 = math.exp %146 : vector<2x64xf32>
    %cst_29 = arith.constant 1.000000e+00 : f32
    %148 = vector.broadcast %cst_29 : f32 to vector<2x64xf32>
    %149 = arith.addf %148, %147 : vector<2x64xf32>
    %150 = arith.divf %148, %149 : vector<2x64xf32>
    %151 = arith.mulf %142, %124 : vector<2x64xf32>
    %152 = arith.mulf %136, %144 : vector<2x64xf32>
    %153 = arith.addf %151, %152 : vector<2x64xf32>
    %154 = math.tanh %153 : vector<2x64xf32>
    %155 = arith.mulf %150, %154 : vector<2x64xf32>
    %156 = vector.extract_strided_slice %7 {offsets = [0, 5, 0], sizes = [2, 1, 256], strides = [1, 1, 1]} : vector<2x8x256xf32> to vector<2x1x256xf32>
    %157 = vector.shape_cast %156 : vector<2x1x256xf32> to vector<2x256xf32>
    %cst_30 = arith.constant dense<0.000000e+00> : vector<2x256xf32>
    %158 = tpu.matmul %155, %8, %cst_30 {dimension_numbers = #tpu.dot_dimension_numbers<[1], [0], [0], [1], [0, 0, 1, 1], [], []>} : vector<2x64xf32>, vector<64x256xf32>, vector<2x256xf32> -> vector<2x256xf32>
    %159 = arith.addf %157, %158 : vector<2x256xf32>
    %160 = vector.extract_strided_slice %159 {offsets = [0, 0], sizes = [2, 64], strides = [1, 1]} : vector<2x256xf32> to vector<2x64xf32>
    %161 = arith.negf %160 : vector<2x64xf32>
    %162 = math.exp %161 : vector<2x64xf32>
    %cst_31 = arith.constant 1.000000e+00 : f32
    %163 = vector.broadcast %cst_31 : f32 to vector<2x64xf32>
    %164 = arith.addf %163, %162 : vector<2x64xf32>
    %165 = arith.divf %163, %164 : vector<2x64xf32>
    %166 = vector.extract_strided_slice %159 {offsets = [0, 64], sizes = [2, 64], strides = [1, 1]} : vector<2x256xf32> to vector<2x64xf32>
    %167 = arith.negf %166 : vector<2x64xf32>
    %168 = math.exp %167 : vector<2x64xf32>
    %cst_32 = arith.constant 1.000000e+00 : f32
    %169 = vector.broadcast %cst_32 : f32 to vector<2x64xf32>
    %170 = arith.addf %169, %168 : vector<2x64xf32>
    %171 = arith.divf %169, %170 : vector<2x64xf32>
    %172 = vector.extract_strided_slice %159 {offsets = [0, 128], sizes = [2, 64], strides = [1, 1]} : vector<2x256xf32> to vector<2x64xf32>
    %173 = math.tanh %172 : vector<2x64xf32>
    %174 = vector.extract_strided_slice %159 {offsets = [0, 192], sizes = [2, 64], strides = [1, 1]} : vector<2x256xf32> to vector<2x64xf32>
    %175 = arith.negf %174 : vector<2x64xf32>
    %176 = math.exp %175 : vector<2x64xf32>
    %cst_33 = arith.constant 1.000000e+00 : f32
    %177 = vector.broadcast %cst_33 : f32 to vector<2x64xf32>
    %178 = arith.addf %177, %176 : vector<2x64xf32>
    %179 = arith.divf %177, %178 : vector<2x64xf32>
    %180 = arith.mulf %171, %153 : vector<2x64xf32>
    %181 = arith.mulf %165, %173 : vector<2x64xf32>
    %182 = arith.addf %180, %181 : vector<2x64xf32>
    %183 = math.tanh %182 : vector<2x64xf32>
    %184 = arith.mulf %179, %183 : vector<2x64xf32>
    %185 = vector.extract_strided_slice %7 {offsets = [0, 6, 0], sizes = [2, 1, 256], strides = [1, 1, 1]} : vector<2x8x256xf32> to vector<2x1x256xf32>
    %186 = vector.shape_cast %185 : vector<2x1x256xf32> to vector<2x256xf32>
    %cst_34 = arith.constant dense<0.000000e+00> : vector<2x256xf32>
    %187 = tpu.matmul %184, %8, %cst_34 {dimension_numbers = #tpu.dot_dimension_numbers<[1], [0], [0], [1], [0, 0, 1, 1], [], []>} : vector<2x64xf32>, vector<64x256xf32>, vector<2x256xf32> -> vector<2x256xf32>
    %188 = arith.addf %186, %187 : vector<2x256xf32>
    %189 = vector.extract_strided_slice %188 {offsets = [0, 0], sizes = [2, 64], strides = [1, 1]} : vector<2x256xf32> to vector<2x64xf32>
    %190 = arith.negf %189 : vector<2x64xf32>
    %191 = math.exp %190 : vector<2x64xf32>
    %cst_35 = arith.constant 1.000000e+00 : f32
    %192 = vector.broadcast %cst_35 : f32 to vector<2x64xf32>
    %193 = arith.addf %192, %191 : vector<2x64xf32>
    %194 = arith.divf %192, %193 : vector<2x64xf32>
    %195 = vector.extract_strided_slice %188 {offsets = [0, 64], sizes = [2, 64], strides = [1, 1]} : vector<2x256xf32> to vector<2x64xf32>
    %196 = arith.negf %195 : vector<2x64xf32>
    %197 = math.exp %196 : vector<2x64xf32>
    %cst_36 = arith.constant 1.000000e+00 : f32
    %198 = vector.broadcast %cst_36 : f32 to vector<2x64xf32>
    %199 = arith.addf %198, %197 : vector<2x64xf32>
    %200 = arith.divf %198, %199 : vector<2x64xf32>
    %201 = vector.extract_strided_slice %188 {offsets = [0, 128], sizes = [2, 64], strides = [1, 1]} : vector<2x256xf32> to vector<2x64xf32>
    %202 = math.tanh %201 : vector<2x64xf32>
    %203 = vector.extract_strided_slice %188 {offsets = [0, 192], sizes = [2, 64], strides = [1, 1]} : vector<2x256xf32> to vector<2x64xf32>
    %204 = arith.negf %203 : vector<2x64xf32>
    %205 = math.exp %204 : vector<2x64xf32>
    %cst_37 = arith.constant 1.000000e+00 : f32
    %206 = vector.broadcast %cst_37 : f32 to vector<2x64xf32>
    %207 = arith.addf %206, %205 : vector<2x64xf32>
    %208 = arith.divf %206, %207 : vector<2x64xf32>
    %209 = arith.mulf %200, %182 : vector<2x64xf32>
    %210 = arith.mulf %194, %202 : vector<2x64xf32>
    %211 = arith.addf %209, %210 : vector<2x64xf32>
    %212 = math.tanh %211 : vector<2x64xf32>
    %213 = arith.mulf %208, %212 : vector<2x64xf32>
    %214 = vector.extract_strided_slice %7 {offsets = [0, 7, 0], sizes = [2, 1, 256], strides = [1, 1, 1]} : vector<2x8x256xf32> to vector<2x1x256xf32>
    %215 = vector.shape_cast %214 : vector<2x1x256xf32> to vector<2x256xf32>
    %cst_38 = arith.constant dense<0.000000e+00> : vector<2x256xf32>
    %216 = tpu.matmul %213, %8, %cst_38 {dimension_numbers = #tpu.dot_dimension_numbers<[1], [0], [0], [1], [0, 0, 1, 1], [], []>} : vector<2x64xf32>, vector<64x256xf32>, vector<2x256xf32> -> vector<2x256xf32>
    %217 = arith.addf %215, %216 : vector<2x256xf32>
    %218 = vector.extract_strided_slice %217 {offsets = [0, 0], sizes = [2, 64], strides = [1, 1]} : vector<2x256xf32> to vector<2x64xf32>
    %219 = arith.negf %218 : vector<2x64xf32>
    %220 = math.exp %219 : vector<2x64xf32>
    %cst_39 = arith.constant 1.000000e+00 : f32
    %221 = vector.broadcast %cst_39 : f32 to vector<2x64xf32>
    %222 = arith.addf %221, %220 : vector<2x64xf32>
    %223 = arith.divf %221, %222 : vector<2x64xf32>
    %224 = vector.extract_strided_slice %217 {offsets = [0, 64], sizes = [2, 64], strides = [1, 1]} : vector<2x256xf32> to vector<2x64xf32>
    %225 = arith.negf %224 : vector<2x64xf32>
    %226 = math.exp %225 : vector<2x64xf32>
    %cst_40 = arith.constant 1.000000e+00 : f32
    %227 = vector.broadcast %cst_40 : f32 to vector<2x64xf32>
    %228 = arith.addf %227, %226 : vector<2x64xf32>
    %229 = arith.divf %227, %228 : vector<2x64xf32>
    %230 = vector.extract_strided_slice %217 {offsets = [0, 128], sizes = [2, 64], strides = [1, 1]} : vector<2x256xf32> to vector<2x64xf32>
    %231 = math.tanh %230 : vector<2x64xf32>
    %232 = vector.extract_strided_slice %217 {offsets = [0, 192], sizes = [2, 64], strides = [1, 1]} : vector<2x256xf32> to vector<2x64xf32>
    %233 = arith.negf %232 : vector<2x64xf32>
    %234 = math.exp %233 : vector<2x64xf32>
    %cst_41 = arith.constant 1.000000e+00 : f32
    %235 = vector.broadcast %cst_41 : f32 to vector<2x64xf32>
    %236 = arith.addf %235, %234 : vector<2x64xf32>
    %237 = arith.divf %235, %236 : vector<2x64xf32>
    %238 = arith.mulf %229, %211 : vector<2x64xf32>
    %239 = arith.mulf %223, %231 : vector<2x64xf32>
    %240 = arith.addf %238, %239 : vector<2x64xf32>
    %241 = math.tanh %240 : vector<2x64xf32>
    %242 = arith.mulf %237, %241 : vector<2x64xf32>
    %c0_42 = arith.constant 0 : index
    %c0_43 = arith.constant 0 : index
    %243 = vector.load %arg4[%c0_42, %c0_43] : memref<64x4xf32, #tpu.memory_space<vmem>>, vector<64x4xf32>
    %cst_44 = arith.constant dense<0.000000e+00> : vector<2x4xf32>
    %244 = tpu.matmul %242, %243, %cst_44 {dimension_numbers = #tpu.dot_dimension_numbers<[1], [0], [0], [1], [0, 0, 1, 1], [], []>} : vector<2x64xf32>, vector<64x4xf32>, vector<2x4xf32> -> vector<2x4xf32>
    %c0_45 = arith.constant 0 : index
    %c0_46 = arith.constant 0 : index
    %245 = vector.load %arg5[%c0_45, %c0_46] : memref<1x4xf32, #tpu.memory_space<vmem>>, vector<1x4xf32>
    %246 = vector.broadcast %245 : vector<1x4xf32> to vector<2x4xf32>
    %247 = arith.addf %244, %246 : vector<2x4xf32>
    %c0_47 = arith.constant 0 : index
    %c0_48 = arith.constant 0 : index
    %c0_49 = arith.constant 0 : index
    %248 = vector.load %arg6[%c0_47, %c0_48, %c0_49] : memref<1x2x4xf32, #tpu.memory_space<vmem>>, vector<1x2x4xf32>
    %249 = vector.shape_cast %248 : vector<1x2x4xf32> to vector<2x4xf32>
    %250 = vector.shape_cast %247 : vector<2x4xf32> to vector<1x2x4xf32>
    tpu.vector_store %arg6[%c0_47, %c0_48, %c0_49], %250 {strides = array<i32>} : memref<1x2x4xf32, #tpu.memory_space<vmem>>, vector<1x2x4xf32>,
    return
  }
}

</mosaic_0001>

<bundles_post_ra>
// kernel: tpu_custom_call.1
= control target key start
LH: loop header
LB: loop body
LE: loop exit
PB: predicated region body
PF: predicated region fallthrough
CT: control target
= control target key end

     0   :  { %11 = vsyncpa [#allocation3], 0  ;;  %s2149_s0 = inlined_call_operand.vmem [shape: f32[2,8,4], index: 0, kind: input, shape index: {}]   ;;  %s2150_s1 = inlined_call_operand.vmem [shape: f32[4,256], index: 1, kind: input, shape index: {}]   ;;  %s2151_s2 = inlined_call_operand.hbm [shape: f32[64,256], index: 2, kind: input, shape index: {}]   ;;  %s2152_s3 = inlined_call_operand.vmem [shape: f32[1,256], index: 3, kind: input, shape index: {}]   ;;  %s2153_s4 = inlined_call_operand.vmem [shape: f32[64,4], index: 4, kind: input, shape index: {}]   ;;  %s2154_s5 = inlined_call_operand.vmem [shape: f32[1,4], index: 5, kind: input, shape index: {}]   ;;  %s2155_s6 = inlined_call_operand.hbm [shape: f32[1,2,4], index: 6, kind: output, shape index: {}]  }
   0x1   :  { %12 = vsyncpa [#allocation4], 0  ;;  %s1869_s21 = smov [#allocation2]   ;;  %s1821_s25 = scalar_lea.hbm %s2151_s2, 2048 }
   0x2   :  { %s22_s22 = sshll.u32 %s1869_s21, 4  ;;  %p1822_p0 = scmp.ne.s32.totalorder %s2151_s2, %s1821_s25  ;;  %s23_s22 = int_to_ptr.vmem [resolvable:$true] %s22_s22 }
   0x3   :  { %p1825_p1 = scmp.lt.u32.totalorder %s1821_s25, %s2151_s2 }
   0x5   :  { %p1827_p2 = pnand %p1825_p1, %p1822_p0 }
   0x7   :  { %1830 = shalt.err (!%p1827_p2)
}
   0x8   :  { %s1831_s30 = scalar_lea.vmem %s23_s22, 2048  ;;  %p1836_p4 = scmp.lt.s32.totalorder %s23_s22, %s23_s22 }
   0x9   :  { %p1832_p3 = scmp.ne.s32.totalorder %s23_s22, %s1831_s30  ;;  %p1837_p5 = scmp.lt.s32.totalorder %s1831_s30, %s1831_s30 }
   0xb   :  { %p1838_p6 = por %p1837_p5, %p1836_p4 }
   0xd   :  { %p1839_p7 = pnand %p1838_p6, %p1832_p3 }
   0xf   :  { %1842 = shalt.err (!%p1839_p7)
}
  0x10   :  { %s1870_s7 = smov 256   ;;  %s1871_s8 = smov 16  }
  0x11   :  { %28 = dma.hbm_to_vmem [thread:$0]  %s2151_s2, 2048, %s23_s22, [#allocation3], %s1870_s7, %s1870_s7, %s1871_s8  }
  0x12   :  { %1865 = dma.done.wait [#allocation3], 2048  }
  0x13   :  { %1866 = vsyncadd [#allocation3], 4294965248  ;;  %v1872_v0 = vmov 0.0   ;;  %v145_v1 = vld [vmem:[#allocation2 + $0x8] sm:$0xff]  ;;  %v147_v2 = vld [vmem:[#allocation2 + $0x18] sm:$0xff]  ;;  %vm62_vm0 = vcmask 1043456   ;;  %v43_v29 = vlaneseq }
  0x14   :  { %131 = vmatprep.mubr.f32.mxu0 %v1872_v0  ;;  %228 = vmatprep.mubr.f32.mxu1 %v1872_v0  ;;  %v144_v3 = vld [vmem:[#allocation2] sm:$0xff]  ;;  %v1926_v4 = vpack.c.bf16 %v147_v2, %v145_v1  ;;  %v146_v5 = vld [vmem:[#allocation2 + $0x10] sm:$0xff]  ;;  %v149_v6 = vld [vmem:[#allocation2 + $0x28] sm:$0xff]  ;;  %vm55_vm1 = vcmask 31744   ;;  %vm294_vm2 = vcmask 1041409   ;;  %vm160_vm3 = vcmask 523264  }
  0x15   :  { %v151_v7 = vld [vmem:[#allocation2 + $0x38] sm:$0xff]  ;;  %v1928_v8 = vpack.c.bf16 %v146_v5, %v144_v3  ;;  %v148_v10 = vld [vmem:[#allocation2 + $0x20] sm:$0xff]  ;;  %v150_v11 = vld [vmem:[#allocation2 + $0x30] sm:$0xff]  ;;  %v44_v30 = vshrl.u32 %v43_v29, 7  ;;  %vm1875_vm4 = vmmov 0   ;;  %s1876_s9 = smov [#allocation5]  }
  0x16   :  { %v1930_v9 = vpack.c.bf16 %v151_v7, %v149_v6  ;;  %v153_v12 = vld [vmem:[#allocation2 + $0x48] sm:$0xff]  ;;  %1481 = vmatprep.subr.bf16.mxu1 %v1926_v4  ;;  %v155_v13 = vld [vmem:[#allocation2 + $0x58] sm:$0xff]  ;;  %v40_v14 = vld [vmem:[%s2150_s1] sm:$0xff]  ;;  %v1937_v15 = vpack.c.bf16 %v150_v11, %v148_v10  ;;  %s1398_s10 = sshll.u32 %s1876_s9, 4  ;;  %vm1390_vm5 = vcmask 25600   ;;  %s1399_s10 = int_to_ptr.vmem [resolvable:$true] %s1398_s10 }
  0x17   :  { %1483 = vmatpush1.bf16.msra.mxu1 %v1928_v8  ;;  %v54_v16 = vcombine.high %v40_v14, %v40_v14  ;;  %v1940_v17 = vpack.c.bf16 %v155_v13, %v153_v12  ;;  %v152_v18 = vld [vmem:[#allocation2 + $0x40] sm:$0xff]  ;;  %v154_v19 = vld [vmem:[#allocation2 + $0x50] sm:$0xff]  ;;  %v157_v21 = vld [vmem:[#allocation2 + $0x68] sm:$0xff]  ;;  %v45_v33 = vsub.s32 0, %v44_v30  ;;  %v49_v44 = vsub.s32 1, %v44_v30  ;;  %s1843_s2 = scalar_lea.vmem %s1399_s10, 32  ;;  %p1848_p9 = scmp.lt.s32.totalorder %s1399_s10, %s1399_s10 }
  0x18   :  { %1485 = vmatprep.subr.bf16.mxu1 %v1930_v9  ;;  %v38_v20 = vld [vmem:[%s2149_s0] sm:$0xff]  ;;  %v159_v22 = vld [vmem:[#allocation2 + $0x78] sm:$0xff]  ;;  %v1946_v23 = vpack.c.bf16 %v154_v19, %v152_v18  ;;  %v156_v25 = vld [vmem:[#allocation2 + $0x60] sm:$0xff]  ;;  %p1844_p8 = scmp.ne.s32.totalorder %s1399_s10, %s1843_s2  ;;  %p1849_p10 = scmp.lt.s32.totalorder %s1843_s2, %s1843_s2 }
  0x19   :  { %1407 = vmatprep.subr.msk.mxu0 %vm62_vm0, %v54_v16  ;;  %v1950_v24 = vpack.c.bf16 %v159_v22, %v157_v21  ;;  %v158_v26 = vld [vmem:[#allocation2 + $0x70] sm:$0xff]  ;;  %v39_v27 = vld [vmem:[%s2149_s0 + $0x8] sm:$0xff] }
  0x1a   :  { %1408 = vmatpush1.msk.msra.mxu0 %vm62_vm0, %v40_v14  ;;  %v1959_v28 = vpack.c.bf16 %v158_v26, %v156_v25  ;;  %v41_v34 = vld [vmem:[%s2152_s3] sm:$0x3]  ;;  %s1873_s3 = smov 64   ;;  %p1850_p11 = por %p1849_p10, %p1848_p9 }
  0x1b   :  { %1487 = vmatpush1.bf16.msra.mxu1 %v1937_v15  ;;  %1409 = vmatmul.mubr.msk.f32.vlgmr.msra.gmra.mrb[0].mxu0 %vm55_vm1, %v38_v20  ;;  %v46_v37 = vrot.slane %v41_v34, %v45_v33  ;;  %v50_v48 = vrot.slane %v41_v34, %v49_v44 }
  0x1c   :  { %1489 = vmatprep.subr.bf16.mxu1 %v1940_v17  ;;  %137 = vmatprep.mubr.f32.mxu0 %v1872_v0  ;;  %p1851_p12 = pnand %p1850_p11, %p1844_p8 }
  0x1d   :  { %1497 = vmatprep.subr.bf16.mxu0 %v1926_v4 }
  0x1e   :  { %1499 = vmatpush1.bf16.msra.mxu0 %v1928_v8 }
  0x1f   :  { %1491 = vmatpush1.bf16.msra.mxu1 %v1946_v23  ;;  %1410 = vmatmul.mubr.msk.f32.gmra.mrb[2].mxu0 %vm55_vm1, %v39_v27 }
  0x20   :  { %1493 = vmatprep.subr.bf16.mxu1 %v1950_v24  ;;  %1501 = vmatprep.subr.bf16.mxu0 %v1930_v9 }
  0x21   :  { %364 = vmatprep.mubr.f32.mxu0 %v1872_v0 }
  0x22   :  { %1503 = vmatpush1.bf16.msra.mxu0 %v1937_v15 }
  0x23   :  { %1495 = vmatpush1.bf16.msra.mxu1 %v1959_v28  ;;  %1505 = vmatprep.subr.bf16.mxu0 %v1940_v17 }
  0x24   :  { %1513 = vmatprep.subr.bf16.mxu1 %v1926_v4 }
  0x26   :  { %229 = vmatmul.mubr.f32.vlgmr.msra.gmra.mrb[0].mxu1 %v1872_v0  ;;  %1507 = vmatpush1.bf16.msra.mxu0 %v1946_v23 }
  0x27   :  { %1509 = vmatprep.subr.bf16.mxu0 %v1950_v24  ;;  %1515 = vmatpush1.bf16.msra.mxu1 %v1928_v8 }
  0x28   :  { %1517 = vmatprep.subr.bf16.mxu1 %v1930_v9  ;;  %505 = vmatprep.mubr.f32.mxu1 %v1872_v0 }
  0x2a   :  { %1511 = vmatpush1.bf16.msra.mxu0 %v1959_v28 }
  0x2b   :  { %1519 = vmatpush1.bf16.msra.mxu1 %v1937_v15  ;;  %1529 = vmatprep.subr.bf16.mxu0 %v1926_v4 }
  0x2c   :  { %1521 = vmatprep.subr.bf16.mxu1 %v1940_v17 }
  0x2f   :  { %1523 = vmatpush1.bf16.msra.mxu1 %v1946_v23 }
  0x30   :  { %1525 = vmatprep.subr.bf16.mxu1 %v1950_v24 }
  0x33   :  { %1527 = vmatpush1.bf16.msra.mxu1 %v1959_v28 }
  0x34   :  { %1545 = vmatprep.subr.bf16.mxu1 %v1926_v4 }
  0xee   :  { %v133_v31 = vpop.f32.mrb[0].mxu0 }
  0xef   :  { %v135_v32 = vpop.f32.mrb[1].mxu0  ;;  %v1986_v38 = vadd.f32 %v133_v31, %v46_v37 }
  0xf0   :  { %v1992_v49 = vadd.f32 %v135_v32, %v50_v48 }
  0xf2   :  { %v139_v35 = vpop.f32.mrb[2].mxu0 }
  0xf3   :  { %v141_v36 = vpop.f32.mrb[3].mxu0  ;;  %v1988_v39 = vadd.f32 %v139_v35, %v46_v37 }
  0xf4   :  { %v1994_v50 = vadd.f32 %v141_v36, %v50_v48 }
  0xf9   :  { %v230_v40 = vpop.f32.mrb[0].mxu1 }
  0xfa   :  { %v237_v41 = vrot.slane %v230_v40, 1  ;;  %v243_v42 = vadd.f32 %v230_v40, %v1986_v38  ;;  %v232_v43 = vpop.f32.mrb[1].mxu1 }
  0xfb   :  { %v238_v51 = vrot.slane %v232_v43, 1  ;;  %v244_v52 = vadd.f32 %v232_v43, %v1992_v49 }
  0xfc   :  { %v245_v45 = vadd.f32 %v237_v41, %v1988_v39  ;;  %v1411_v46 = vmul.f32 -1.442695, %v243_v42 }
  0xfd   :  { %v246_v54 = vadd.f32 %v238_v51, %v1994_v50  ;;  %v1413_v2 = vmul.f32 -1.442695, %v244_v52 }
  0xfe   :  { %1629 = vpow2.f32 %v1411_v46  ;;  %v1412_v47 = vmul.f32 -1.442695, %v245_v45 }
  0xff   :  { %v1414_v1 = vmul.f32 -1.442695, %v246_v54 }
 0x100   :  { %1631 = vpow2.f32 %v1412_v47 }
 0x101   :  { %1633 = vtanh.f32 %v244_v52 }
 0x108   :  { %v1630_v53 = vpop.eup %1629 }
 0x109   :  { %v253_v55 = vadd.f32 1.0, %v1630_v53 }
 0x10a   :  { %v1632_v56 = vpop.eup %1631 }
 0x10b   :  { %v254_v57 = vadd.f32 1.0, %v1632_v56  ;;  %1635 = vrcp.f32 %v253_v55  ;;  %v1634_v58 = vpop.eup %1633 }
 0x10c   :  { %1637 = vtanh.f32 %v246_v54 }
 0x10d   :  { %1639 = vrcp.f32 %v254_v57 }
 0x10e   :  { %1641 = vpow2.f32 %v1414_v1 }
 0x10f   :  { %1643 = vpow2.f32 %v1413_v2 }
 0x115   :  { %v1636_v59 = vpop.eup %1635 }
 0x116   :  { %v1638_v60 = vpop.eup %1637  ;;  %v275_v61 = vmul.f32 %v1636_v59, %v1634_v58  ;;  %v273_v13 = vmul.f32 0.0, %v1636_v59 }
 0x117   :  { %v1640_v62 = vpop.eup %1639 }
 0x118   :  { %v276_v63 = vmul.f32 %v1640_v62, %v1638_v60  ;;  %v1642_v3 = vpop.eup %1641  ;;  %v274_v7 = vmul.f32 0.0, %v1640_v62 }
 0x119   :  { %v268_v5 = vadd.f32 1.0, %v1642_v3  ;;  %v1644_v6 = vpop.eup %1643 }
 0x11a   :  { %281 = vrot.lane.b32.xlu0 %v276_v63, %s1873_s3  ;;  %v267_v12 = vadd.f32 1.0, %v1644_v6 }
 0x11b   :  { %1645 = vrcp.f32 %v268_v5 }
 0x11e   :  { %279 = vrot.lane.b32.xlu0 %v275_v61, %s1873_s3 }
 0x125   :  { %v1646_v18 = vpop.eup %1645 }
 0x18c   :  { %v282_v10 = vpop.permute.xlu0 %281 }
 0x18d   :  { %v286_v11 = vadd.f32 %v282_v10, %v274_v7 }
 0x18f   :  { %1647 = vtanh.f32 %v286_v11  ;;  %v412_v47 = vrot.slane %v286_v11, 7 }
 0x190   :  { %v280_v14 = vpop.permute.xlu0 %279  ;;  %1649 = vrcp.f32 %v267_v12 }
 0x191   :  { %v285_v16 = vadd.f32 %v280_v14, %v273_v13 }
 0x193   :  { %1651 = vtanh.f32 %v285_v16  ;;  %v411_v52 = vrot.slane %v285_v16, 7 }
 0x199   :  { %v1648_v19 = vpop.eup %1647 }
 0x19a   :  { %v290_v20 = vmul.f32 %v1648_v19, %v1646_v18  ;;  %v1650_v21 = vpop.eup %1649 }
 0x19c   :  { %v293_v26 = vrot.slane %v290_v20, 7 }
 0x19d   :  { %v1652_v22 = vpop.eup %1651 }
 0x19e   :  { %v289_v25 = vmul.f32 %v1652_v22, %v1650_v21 }
 0x1a0   :  { %v295_v27 = vsel %vm294_vm2, %v293_v26, %v289_v25 }
 0x1a1   :  { %296 = vrot.lane.b32.xlu1 %v295_v27, %s1873_s3 }
 0x213   :  { %v297_v29 = vpop.permute.xlu1 %296 }
 0x214   :  { %1415 = vmatmul.mubr.msk.f32.vlgmr.msra.gmra.mrb[4].mxu0 %vm160_vm3, %v297_v29 }
 0x215   :  { %1531 = vmatpush1.bf16.msra.mxu0 %v1928_v8  ;;  %649 = vmatprep.mubr.f32.mxu0 %v1872_v0 }
 0x216   :  { %1533 = vmatprep.subr.bf16.mxu0 %v1930_v9 }
 0x219   :  { %1535 = vmatpush1.bf16.msra.mxu0 %v1937_v15 }
 0x21a   :  { %1537 = vmatprep.subr.bf16.mxu0 %v1940_v17 }
 0x21d   :  { %1539 = vmatpush1.bf16.msra.mxu0 %v1946_v23 }
 0x21e   :  { %1541 = vmatprep.subr.bf16.mxu0 %v1950_v24 }
 0x221   :  { %1543 = vmatpush1.bf16.msra.mxu0 %v1959_v28 }
 0x222   :  { %1561 = vmatprep.subr.bf16.mxu0 %v1926_v4 }
 0x2e7   :  { %v366_v30 = vpop.f32.mrb[4].mxu0 }
 0x2e8   :  { %v373_v31 = vrot.slane %v366_v30, 7  ;;  %v381_v32 = vadd.f32 %v366_v30, %v1988_v39  ;;  %v368_v33 = vpop.f32.mrb[5].mxu0 }
 0x2e9   :  { %v374_v37 = vrot.slane %v368_v33, 7  ;;  %v382_v40 = vadd.f32 %v368_v33, %v1994_v50 }
 0x2ea   :  { %v379_v34 = vadd.f32 %v373_v31, %v1986_v38  ;;  %v1417_v35 = vmul.f32 -1.442695, %v381_v32 }
 0x2eb   :  { %v380_v42 = vadd.f32 %v374_v37, %v1992_v49  ;;  %v1419_v58 = vmul.f32 -1.442695, %v382_v40 }
 0x2ec   :  { %v1416_v36 = vmul.f32 -1.442695, %v379_v34  ;;  %1653 = vpow2.f32 %v1417_v35 }
 0x2ed   :  { %v1418_v59 = vmul.f32 -1.442695, %v380_v42 }
 0x2ee   :  { %1655 = vpow2.f32 %v1416_v36 }
 0x2ef   :  { %1657 = vtanh.f32 %v382_v40 }
 0x2f6   :  { %v1654_v41 = vpop.eup %1653 }
 0x2f7   :  { %v390_v43 = vadd.f32 1.0, %v1654_v41 }
 0x2f8   :  { %v1656_v44 = vpop.eup %1655 }
 0x2f9   :  { %v389_v45 = vadd.f32 1.0, %v1656_v44  ;;  %1659 = vrcp.f32 %v390_v43  ;;  %v1658_v46 = vpop.eup %1657 }
 0x2fa   :  { %1661 = vtanh.f32 %v380_v42 }
 0x2fb   :  { %1663 = vrcp.f32 %v389_v45 }
 0x2fc   :  { %1665 = vpow2.f32 %v1419_v58 }
 0x2fd   :  { %1667 = vpow2.f32 %v1418_v59 }
 0x303   :  { %v1660_v48 = vpop.eup %1659 }
 0x304   :  { %v1662_v51 = vpop.eup %1661  ;;  %v418_v53 = vmul.f32 %v1660_v48, %v1658_v46  ;;  %v416_v54 = vmul.f32 %v1660_v48, %v412_v47 }
 0x305   :  { %v1664_v55 = vpop.eup %1663 }
 0x306   :  { %423 = vrot.lane.b32.xlu0 %v418_v53, %s1873_s3  ;;  %v417_v56 = vmul.f32 %v1664_v55, %v1662_v51  ;;  %v415_v57 = vmul.f32 %v1664_v55, %v411_v52  ;;  %v1666_v60 = vpop.eup %1665 }
 0x307   :  { %v1668_v61 = vpop.eup %1667  ;;  %v404_v62 = vadd.f32 1.0, %v1666_v60 }
 0x308   :  { %421 = vrot.lane.b32.xlu1 %v417_v56, %s1873_s3  ;;  %v403_v63 = vadd.f32 1.0, %v1668_v61 }
 0x309   :  { %1669 = vrcp.f32 %v404_v62 }
 0x313   :  { %v1670_v6 = vpop.eup %1669 }
 0x378   :  { %v424_v1 = vpop.permute.xlu0 %423 }
 0x379   :  { %v428_v2 = vadd.f32 %v424_v1, %v416_v54 }
 0x37a   :  { %v422_v3 = vpop.permute.xlu1 %421 }
 0x37b   :  { %1671 = vtanh.f32 %v428_v2  ;;  %v427_v5 = vadd.f32 %v422_v3, %v415_v57  ;;  %v555_v44 = vrot.slane %v428_v2, 7 }
 0x37c   :  { %1673 = vrcp.f32 %v403_v63 }
 0x37d   :  { %1675 = vtanh.f32 %v427_v5  ;;  %v554_v42 = vrot.slane %v427_v5, 7 }
 0x385   :  { %v1672_v7 = vpop.eup %1671 }
 0x386   :  { %v1674_v10 = vpop.eup %1673  ;;  %v432_v11 = vmul.f32 %v1672_v7, %v1670_v6 }
 0x387   :  { %v1676_v12 = vpop.eup %1675 }
 0x388   :  { %v431_v13 = vmul.f32 %v1676_v12, %v1674_v10 }
 0x38a   :  { %v435_v14 = vrot.slane %v431_v13, 1 }
 0x38c   :  { %v436_v16 = vsel %vm294_vm2, %v432_v11, %v435_v14 }
 0x38d   :  { %437 = vrot.lane.b32.xlu1 %v436_v16, %s1873_s3 }
 0x3ff   :  { %v438_v18 = vpop.permute.xlu1 %437 }
 0x400   :  { %1420 = vmatmul.mubr.msk.f32.vlgmr.msra.gmra.mrb[2].mxu1 %vm160_vm3, %v438_v18 }
 0x401   :  { %1547 = vmatpush1.bf16.msra.mxu1 %v1928_v8  ;;  %793 = vmatprep.mubr.f32.mxu1 %v1872_v0 }
 0x402   :  { %1549 = vmatprep.subr.bf16.mxu1 %v1930_v9 }
 0x405   :  { %1551 = vmatpush1.bf16.msra.mxu1 %v1937_v15 }
 0x406   :  { %1553 = vmatprep.subr.bf16.mxu1 %v1940_v17 }
 0x409   :  { %1555 = vmatpush1.bf16.msra.mxu1 %v1946_v23 }
 0x40a   :  { %1557 = vmatprep.subr.bf16.mxu1 %v1950_v24 }
 0x40d   :  { %1559 = vmatpush1.bf16.msra.mxu1 %v1959_v28 }
 0x40e   :  { %1577 = vmatprep.subr.bf16.mxu1 %v1926_v4 }
 0x4d3   :  { %v507_v19 = vpop.f32.mrb[2].mxu1 }
 0x4d4   :  { %v514_v20 = vrot.slane %v507_v19, 6  ;;  %v516_v21 = vrot.slane %v507_v19, 7  ;;  %v509_v22 = vpop.f32.mrb[3].mxu1 }
 0x4d5   :  { %v515_v30 = vrot.slane %v509_v22, 6  ;;  %v517_v31 = vrot.slane %v509_v22, 7 }
 0x4d6   :  { %v522_v25 = vadd.f32 %v514_v20, %v1986_v38  ;;  %v524_v26 = vadd.f32 %v516_v21, %v1988_v39 }
 0x4d7   :  { %v523_v32 = vadd.f32 %v515_v30, %v1992_v49  ;;  %v525_v33 = vadd.f32 %v517_v31, %v1994_v50 }
 0x4d8   :  { %v1421_v27 = vmul.f32 -1.442695, %v522_v25  ;;  %v1422_v29 = vmul.f32 -1.442695, %v524_v26 }
 0x4d9   :  { %v1423_v52 = vmul.f32 -1.442695, %v523_v32  ;;  %v1424_v53 = vmul.f32 -1.442695, %v525_v33 }
 0x4da   :  { %1677 = vpow2.f32 %v1421_v27 }
 0x4db   :  { %1679 = vpow2.f32 %v1422_v29 }
 0x4dc   :  { %1681 = vtanh.f32 %v523_v32 }
 0x4dd   :  { %1683 = vtanh.f32 %v525_v33 }
 0x4e4   :  { %v1678_v34 = vpop.eup %1677 }
 0x4e5   :  { %v1680_v35 = vpop.eup %1679  ;;  %v532_v36 = vadd.f32 1.0, %v1678_v34 }
 0x4e6   :  { %v533_v37 = vadd.f32 1.0, %v1680_v35  ;;  %v1682_v40 = vpop.eup %1681 }
 0x4e7   :  { %1685 = vrcp.f32 %v532_v36  ;;  %v1684_v41 = vpop.eup %1683 }
 0x4e8   :  { %1687 = vrcp.f32 %v533_v37 }
 0x4e9   :  { %1689 = vpow2.f32 %v1423_v52 }
 0x4ea   :  { %1691 = vpow2.f32 %v1424_v53 }
 0x4f1   :  { %v1686_v43 = vpop.eup %1685 }
 0x4f2   :  { %v1688_v45 = vpop.eup %1687  ;;  %v560_v46 = vmul.f32 %v1686_v43, %v1682_v40  ;;  %v558_v47 = vmul.f32 %v1686_v43, %v554_v42 }
 0x4f3   :  { %v561_v48 = vmul.f32 %v1688_v45, %v1684_v41  ;;  %v559_v51 = vmul.f32 %v1688_v45, %v555_v44  ;;  %v1690_v54 = vpop.eup %1689 }
 0x4f4   :  { %564 = vrot.lane.b32.xlu0 %v560_v46, %s1873_s3  ;;  %v1692_v55 = vpop.eup %1691  ;;  %v546_v56 = vadd.f32 1.0, %v1690_v54 }
 0x4f5   :  { %566 = vrot.lane.b32.xlu1 %v561_v48, %s1873_s3  ;;  %v547_v57 = vadd.f32 1.0, %v1692_v55 }
 0x4f6   :  { %1693 = vrcp.f32 %v546_v56 }
 0x4f7   :  { %1695 = vrcp.f32 %v547_v57 }
 0x500   :  { %v1694_v62 = vpop.eup %1693 }
 0x501   :  { %v1696_v63 = vpop.eup %1695 }
 0x566   :  { %v565_v58 = vpop.permute.xlu0 %564 }
 0x567   :  { %v567_v59 = vpop.permute.xlu1 %566  ;;  %v570_v60 = vadd.f32 %v565_v58, %v558_v47 }
 0x568   :  { %v571_v61 = vadd.f32 %v567_v59, %v559_v51 }
 0x569   :  { %1697 = vtanh.f32 %v570_v60  ;;  %v698_v34 = vrot.slane %v570_v60, 7 }
 0x56a   :  { %1699 = vtanh.f32 %v571_v61  ;;  %v699_v36 = vrot.slane %v571_v61, 7 }
 0x573   :  { %v1698_v1 = vpop.eup %1697 }
 0x574   :  { %v1700_v2 = vpop.eup %1699  ;;  %v574_v3 = vmul.f32 %v1698_v1, %v1694_v62 }
 0x575   :  { %v575_v5 = vmul.f32 %v1700_v2, %v1696_v63 }
 0x576   :  { %v578_v6 = vrot.slane %v574_v3, 2 }
 0x577   :  { %v579_v7 = vrot.slane %v575_v5, 1 }
 0x579   :  { %v580_v10 = vsel %vm294_vm2, %v579_v7, %v578_v6 }
 0x57a   :  { %581 = vrot.lane.b32.xlu0 %v580_v10, %s1873_s3 }
 0x5ec   :  { %v582_v11 = vpop.permute.xlu0 %581 }
 0x5ed   :  { %1425 = vmatmul.mubr.msk.f32.vlgmr.msra.gmra.mrb[6].mxu0 %vm160_vm3, %v582_v11 }
 0x5ee   :  { %1563 = vmatpush1.bf16.msra.mxu0 %v1928_v8  ;;  %937 = vmatprep.mubr.f32.mxu0 %v1872_v0 }
 0x5ef   :  { %1565 = vmatprep.subr.bf16.mxu0 %v1930_v9 }
 0x5f2   :  { %1567 = vmatpush1.bf16.msra.mxu0 %v1937_v15 }
 0x5f3   :  { %1569 = vmatprep.subr.bf16.mxu0 %v1940_v17 }
 0x5f6   :  { %1571 = vmatpush1.bf16.msra.mxu0 %v1946_v23 }
 0x5f7   :  { %1573 = vmatprep.subr.bf16.mxu0 %v1950_v24 }
 0x5fa   :  { %1575 = vmatpush1.bf16.msra.mxu0 %v1959_v28 }
 0x5fb   :  { %1593 = vmatprep.subr.bf16.mxu0 %v1926_v4 }
 0x6c0   :  { %v651_v12 = vpop.f32.mrb[6].mxu0 }
 0x6c1   :  { %v658_v13 = vrot.slane %v651_v12, 5  ;;  %v660_v14 = vrot.slane %v651_v12, 6  ;;  %v653_v16 = vpop.f32.mrb[7].mxu0 }
 0x6c2   :  { %v659_v22 = vrot.slane %v653_v16, 5  ;;  %v661_v25 = vrot.slane %v653_v16, 6 }
 0x6c3   :  { %v666_v18 = vadd.f32 %v658_v13, %v1986_v38  ;;  %v668_v19 = vadd.f32 %v660_v14, %v1988_v39 }
 0x6c4   :  { %v667_v26 = vadd.f32 %v659_v22, %v1992_v49  ;;  %v669_v27 = vadd.f32 %v661_v25, %v1994_v50 }
 0x6c5   :  { %v1426_v20 = vmul.f32 -1.442695, %v666_v18  ;;  %v1427_v21 = vmul.f32 -1.442695, %v668_v19 }
 0x6c6   :  { %v1428_v44 = vmul.f32 -1.442695, %v667_v26  ;;  %v1429_v45 = vmul.f32 -1.442695, %v669_v27 }
 0x6c7   :  { %1701 = vpow2.f32 %v1426_v20 }
 0x6c8   :  { %1703 = vpow2.f32 %v1427_v21 }
 0x6c9   :  { %1705 = vtanh.f32 %v667_v26 }
 0x6ca   :  { %1707 = vtanh.f32 %v669_v27 }
 0x6d1   :  { %v1702_v29 = vpop.eup %1701 }
 0x6d2   :  { %v1704_v4 = vpop.eup %1703  ;;  %v676_v30 = vadd.f32 1.0, %v1702_v29 }
 0x6d3   :  { %v677_v31 = vadd.f32 1.0, %v1704_v4  ;;  %v1706_v32 = vpop.eup %1705 }
 0x6d4   :  { %1709 = vrcp.f32 %v676_v30  ;;  %v1708_v33 = vpop.eup %1707 }
 0x6d5   :  { %1711 = vrcp.f32 %v677_v31 }
 0x6d6   :  { %1713 = vpow2.f32 %v1428_v44 }
 0x6d7   :  { %1715 = vpow2.f32 %v1429_v45 }
 0x6de   :  { %v1710_v35 = vpop.eup %1709 }
 0x6df   :  { %v1712_v37 = vpop.eup %1711  ;;  %v704_v40 = vmul.f32 %v1710_v35, %v1706_v32  ;;  %v702_v41 = vmul.f32 %v1710_v35, %v698_v34 }
 0x6e0   :  { %v705_v42 = vmul.f32 %v1712_v37, %v1708_v33  ;;  %v703_v43 = vmul.f32 %v1712_v37, %v699_v36  ;;  %v1714_v46 = vpop.eup %1713 }
 0x6e1   :  { %708 = vrot.lane.b32.xlu1 %v704_v40, %s1873_s3  ;;  %v1716_v47 = vpop.eup %1715  ;;  %v690_v48 = vadd.f32 1.0, %v1714_v46 }
 0x6e2   :  { %710 = vrot.lane.b32.xlu0 %v705_v42, %s1873_s3  ;;  %v691_v51 = vadd.f32 1.0, %v1716_v47 }
 0x6e3   :  { %1717 = vrcp.f32 %v690_v48 }
 0x6e4   :  { %1719 = vrcp.f32 %v691_v51 }
 0x6ed   :  { %v1718_v56 = vpop.eup %1717 }
 0x6ee   :  { %v1720_v57 = vpop.eup %1719 }
 0x753   :  { %v709_v52 = vpop.permute.xlu1 %708 }
 0x754   :  { %v711_v53 = vpop.permute.xlu0 %710  ;;  %v714_v54 = vadd.f32 %v709_v52, %v702_v41 }
 0x755   :  { %v715_v55 = vadd.f32 %v711_v53, %v703_v43 }
 0x756   :  { %1721 = vtanh.f32 %v714_v54  ;;  %v842_v29 = vrot.slane %v714_v54, 7 }
 0x757   :  { %1723 = vtanh.f32 %v715_v55  ;;  %v843_v30 = vrot.slane %v715_v55, 7 }
 0x760   :  { %v1722_v58 = vpop.eup %1721 }
 0x761   :  { %v1724_v59 = vpop.eup %1723  ;;  %v718_v60 = vmul.f32 %v1722_v58, %v1718_v56 }
 0x762   :  { %v719_v61 = vmul.f32 %v1724_v59, %v1720_v57 }
 0x763   :  { %v722_v62 = vrot.slane %v718_v60, 3 }
 0x764   :  { %v723_v63 = vrot.slane %v719_v61, 2 }
 0x766   :  { %v724_v1 = vsel %vm294_vm2, %v723_v63, %v722_v62 }
 0x767   :  { %725 = vrot.lane.b32.xlu1 %v724_v1, %s1873_s3 }
 0x7d9   :  { %v726_v2 = vpop.permute.xlu1 %725 }
 0x7da   :  { %1430 = vmatmul.mubr.msk.f32.vlgmr.msra.gmra.mrb[4].mxu1 %vm160_vm3, %v726_v2 }
 0x7db   :  { %1579 = vmatpush1.bf16.msra.mxu1 %v1928_v8  ;;  %1081 = vmatprep.mubr.f32.mxu1 %v1872_v0 }
 0x7dc   :  { %1581 = vmatprep.subr.bf16.mxu1 %v1930_v9 }
 0x7df   :  { %1583 = vmatpush1.bf16.msra.mxu1 %v1937_v15 }
 0x7e0   :  { %1585 = vmatprep.subr.bf16.mxu1 %v1940_v17 }
 0x7e3   :  { %1587 = vmatpush1.bf16.msra.mxu1 %v1946_v23 }
 0x7e4   :  { %1589 = vmatprep.subr.bf16.mxu1 %v1950_v24 }
 0x7e7   :  { %1591 = vmatpush1.bf16.msra.mxu1 %v1959_v28 }
 0x8ad   :  { %v795_v3 = vpop.f32.mrb[4].mxu1 }
 0x8ae   :  { %v802_v5 = vrot.slane %v795_v3, 4  ;;  %v804_v6 = vrot.slane %v795_v3, 5  ;;  %v797_v7 = vpop.f32.mrb[5].mxu1 }
 0x8af   :  { %v803_v14 = vrot.slane %v797_v7, 4  ;;  %v805_v16 = vrot.slane %v797_v7, 5 }
 0x8b0   :  { %v810_v10 = vadd.f32 %v802_v5, %v1986_v38  ;;  %v812_v11 = vadd.f32 %v804_v6, %v1988_v39 }
 0x8b1   :  { %v811_v18 = vadd.f32 %v803_v14, %v1992_v49  ;;  %v813_v19 = vadd.f32 %v805_v16, %v1994_v50 }
 0x8b2   :  { %v1431_v12 = vmul.f32 -1.442695, %v810_v10  ;;  %v1432_v13 = vmul.f32 -1.442695, %v812_v11 }
 0x8b3   :  { %v1433_v36 = vmul.f32 -1.442695, %v811_v18  ;;  %v1434_v37 = vmul.f32 -1.442695, %v813_v19 }
 0x8b4   :  { %1725 = vpow2.f32 %v1431_v12 }
 0x8b5   :  { %1727 = vpow2.f32 %v1432_v13 }
 0x8b6   :  { %1729 = vtanh.f32 %v811_v18 }
 0x8b7   :  { %1731 = vtanh.f32 %v813_v19 }
 0x8be   :  { %v1726_v20 = vpop.eup %1725 }
 0x8bf   :  { %v1728_v21 = vpop.eup %1727  ;;  %v820_v22 = vadd.f32 1.0, %v1726_v20 }
 0x8c0   :  { %v821_v25 = vadd.f32 1.0, %v1728_v21  ;;  %v1730_v26 = vpop.eup %1729 }
 0x8c1   :  { %1733 = vrcp.f32 %v820_v22  ;;  %v1732_v27 = vpop.eup %1731 }
 0x8c2   :  { %1735 = vrcp.f32 %v821_v25 }
 0x8c3   :  { %1737 = vpow2.f32 %v1433_v36 }
 0x8c4   :  { %1739 = vpow2.f32 %v1434_v37 }
 0x8cb   :  { %v1734_v4 = vpop.eup %1733 }
 0x8cc   :  { %v1736_v31 = vpop.eup %1735  ;;  %v848_v32 = vmul.f32 %v1734_v4, %v1730_v26  ;;  %v846_v33 = vmul.f32 %v1734_v4, %v842_v29 }
 0x8cd   :  { %v849_v34 = vmul.f32 %v1736_v31, %v1732_v27  ;;  %v847_v35 = vmul.f32 %v1736_v31, %v843_v30  ;;  %v1738_v40 = vpop.eup %1737 }
 0x8ce   :  { %852 = vrot.lane.b32.xlu0 %v848_v32, %s1873_s3  ;;  %v1740_v41 = vpop.eup %1739  ;;  %v834_v42 = vadd.f32 1.0, %v1738_v40 }
 0x8cf   :  { %854 = vrot.lane.b32.xlu1 %v849_v34, %s1873_s3  ;;  %v835_v43 = vadd.f32 1.0, %v1740_v41 }
 0x8d0   :  { %1741 = vrcp.f32 %v834_v42 }
 0x8d1   :  { %1743 = vrcp.f32 %v835_v43 }
 0x8da   :  { %v1742_v48 = vpop.eup %1741 }
 0x8db   :  { %v1744_v51 = vpop.eup %1743 }
 0x940   :  { %v853_v44 = vpop.permute.xlu0 %852 }
 0x941   :  { %v855_v45 = vpop.permute.xlu1 %854  ;;  %v858_v46 = vadd.f32 %v853_v44, %v846_v33 }
 0x942   :  { %v859_v47 = vadd.f32 %v855_v45, %v847_v35 }
 0x943   :  { %1745 = vtanh.f32 %v858_v46  ;;  %v986_v11 = vrot.slane %v858_v46, 7 }
 0x944   :  { %1747 = vtanh.f32 %v859_v47  ;;  %v987_v13 = vrot.slane %v859_v47, 7 }
 0x94d   :  { %v1746_v52 = vpop.eup %1745 }
 0x94e   :  { %v1748_v53 = vpop.eup %1747  ;;  %v862_v54 = vmul.f32 %v1746_v52, %v1742_v48 }
 0x94f   :  { %v863_v55 = vmul.f32 %v1748_v53, %v1744_v51 }
 0x950   :  { %v866_v56 = vrot.slane %v862_v54, 4 }
 0x951   :  { %v867_v57 = vrot.slane %v863_v55, 3 }
 0x953   :  { %v868_v58 = vsel %vm294_vm2, %v867_v57, %v866_v56 }
 0x954   :  { %869 = vrot.lane.b32.xlu0 %v868_v58, %s1873_s3 }
 0x9c6   :  { %v870_v59 = vpop.permute.xlu0 %869 }
 0x9c7   :  { %1435 = vmatmul.mubr.msk.f32.vlgmr.msra.gmra.mrb[8].mxu0 %vm160_vm3, %v870_v59 }
 0x9c8   :  { %1595 = vmatpush1.bf16.msra.mxu0 %v1928_v8  ;;  %1225 = vmatprep.mubr.f32.mxu0 %v1872_v0 }
 0x9c9   :  { %1597 = vmatprep.subr.bf16.mxu0 %v1930_v9 }
 0x9cc   :  { %1599 = vmatpush1.bf16.msra.mxu0 %v1937_v15 }
 0x9cd   :  { %1601 = vmatprep.subr.bf16.mxu0 %v1940_v17 }
 0x9d0   :  { %1603 = vmatpush1.bf16.msra.mxu0 %v1946_v23 }
 0x9d1   :  { %1605 = vmatprep.subr.bf16.mxu0 %v1950_v24 }
 0x9d4   :  { %1607 = vmatpush1.bf16.msra.mxu0 %v1959_v28 }
 0xa9a   :  { %v939_v60 = vpop.f32.mrb[8].mxu0 }
 0xa9b   :  { %v946_v61 = vrot.slane %v939_v60, 3  ;;  %v948_v62 = vrot.slane %v939_v60, 4  ;;  %v941_v63 = vpop.f32.mrb[9].mxu0 }
 0xa9c   :  { %v947_v15 = vrot.slane %v941_v63, 3  ;;  %v949_v17 = vrot.slane %v941_v63, 4 }
 0xa9d   :  { %v954_v8 = vadd.f32 %v946_v61, %v1986_v38  ;;  %v956_v1 = vadd.f32 %v948_v62, %v1988_v39 }
 0xa9e   :  { %v955_v23 = vadd.f32 %v947_v15, %v1992_v49  ;;  %v957_v24 = vadd.f32 %v949_v17, %v1994_v50 }
 0xa9f   :  { %v1436_v2 = vmul.f32 -1.442695, %v954_v8  ;;  %v1437_v9 = vmul.f32 -1.442695, %v956_v1 }
 0xaa0   :  { %v1438_v21 = vmul.f32 -1.442695, %v955_v23  ;;  %v1439_v22 = vmul.f32 -1.442695, %v957_v24 }
 0xaa1   :  { %1749 = vpow2.f32 %v1436_v2 }
 0xaa2   :  { %1751 = vpow2.f32 %v1437_v9 }
 0xaa3   :  { %1753 = vtanh.f32 %v955_v23 }
 0xaa4   :  { %1755 = vtanh.f32 %v957_v24 }
 0xaab   :  { %v1750_v3 = vpop.eup %1749 }
 0xaac   :  { %v1752_v28 = vpop.eup %1751  ;;  %v964_v5 = vadd.f32 1.0, %v1750_v3 }
 0xaad   :  { %v965_v6 = vadd.f32 1.0, %v1752_v28  ;;  %v1754_v7 = vpop.eup %1753 }
 0xaae   :  { %1757 = vrcp.f32 %v964_v5  ;;  %v1756_v10 = vpop.eup %1755 }
 0xaaf   :  { %1759 = vrcp.f32 %v965_v6 }
 0xab0   :  { %1761 = vpow2.f32 %v1438_v21 }
 0xab1   :  { %1763 = vpow2.f32 %v1439_v22 }
 0xab8   :  { %v1758_v12 = vpop.eup %1757 }
 0xab9   :  { %v1760_v14 = vpop.eup %1759  ;;  %v992_v16 = vmul.f32 %v1758_v12, %v1754_v7  ;;  %v990_v18 = vmul.f32 %v1758_v12, %v986_v11 }
 0xaba   :  { %v993_v19 = vmul.f32 %v1760_v14, %v1756_v10  ;;  %v991_v20 = vmul.f32 %v1760_v14, %v987_v13  ;;  %v1762_v25 = vpop.eup %1761 }
 0xabb   :  { %996 = vrot.lane.b32.xlu1 %v992_v16, %s1873_s3  ;;  %v1764_v26 = vpop.eup %1763  ;;  %v978_v27 = vadd.f32 1.0, %v1762_v25 }
 0xabc   :  { %998 = vrot.lane.b32.xlu0 %v993_v19, %s1873_s3  ;;  %v979_v29 = vadd.f32 1.0, %v1764_v26 }
 0xabd   :  { %1765 = vrcp.f32 %v978_v27 }
 0xabe   :  { %1767 = vrcp.f32 %v979_v29 }
 0xac7   :  { %v1766_v33 = vpop.eup %1765 }
 0xac8   :  { %v1768_v34 = vpop.eup %1767 }
 0xb2d   :  { %v997_v4 = vpop.permute.xlu1 %996 }
 0xb2e   :  { %v999_v30 = vpop.permute.xlu0 %998  ;;  %v1002_v31 = vadd.f32 %v997_v4, %v990_v18 }
 0xb2f   :  { %v1003_v32 = vadd.f32 %v999_v30, %v991_v20 }
 0xb30   :  { %1769 = vtanh.f32 %v1002_v31  ;;  %v1130_v1 = vrot.slane %v1002_v31, 7 }
 0xb31   :  { %1771 = vtanh.f32 %v1003_v32  ;;  %v1131_v9 = vrot.slane %v1003_v32, 7 }
 0xb3a   :  { %v1770_v35 = vpop.eup %1769 }
 0xb3b   :  { %v1772_v36 = vpop.eup %1771  ;;  %v1006_v37 = vmul.f32 %v1770_v35, %v1766_v33 }
 0xb3c   :  { %v1007_v40 = vmul.f32 %v1772_v36, %v1768_v34 }
 0xb3d   :  { %v1010_v41 = vrot.slane %v1006_v37, 5 }
 0xb3e   :  { %v1011_v42 = vrot.slane %v1007_v40, 4 }
 0xb40   :  { %v1012_v43 = vsel %vm294_vm2, %v1011_v42, %v1010_v41 }
 0xb41   :  { %1013 = vrot.lane.b32.xlu1 %v1012_v43, %s1873_s3 }
 0xbb3   :  { %v1014_v44 = vpop.permute.xlu1 %1013 }
 0xbb4   :  { %1440 = vmatmul.mubr.msk.f32.vlgmr.msra.gmra.mrb[6].mxu1 %vm160_vm3, %v1014_v44 }
 0xbb5   :  { %1477 = vmatprep.mubr.msk.f32.mxu1 %vm1875_vm4, %v1872_v0  ;;  %v1303_v0 = vld [vmem:[%s2153_s4 + $0x38] sm:$0xff] }
 0xc87   :  { %v1083_v45 = vpop.f32.mrb[6].mxu1 }
 0xc88   :  { %v1090_v46 = vrot.slane %v1083_v45, 2  ;;  %v1092_v47 = vrot.slane %v1083_v45, 3  ;;  %v1085_v48 = vpop.f32.mrb[7].mxu1 }
 0xc89   :  { %v1091_v55 = vrot.slane %v1085_v48, 2  ;;  %v1093_v56 = vrot.slane %v1085_v48, 3 }
 0xc8a   :  { %v1098_v51 = vadd.f32 %v1090_v46, %v1986_v38  ;;  %v1100_v52 = vadd.f32 %v1092_v47, %v1988_v39 }
 0xc8b   :  { %v1099_v57 = vadd.f32 %v1091_v55, %v1992_v49  ;;  %v1101_v58 = vadd.f32 %v1093_v56, %v1994_v50 }
 0xc8c   :  { %v1441_v53 = vmul.f32 -1.442695, %v1098_v51  ;;  %v1442_v54 = vmul.f32 -1.442695, %v1100_v52 }
 0xc8d   :  { %v1443_v28 = vmul.f32 -1.442695, %v1099_v57  ;;  %v1444_v5 = vmul.f32 -1.442695, %v1101_v58 }
 0xc8e   :  { %1773 = vpow2.f32 %v1441_v53 }
 0xc8f   :  { %1775 = vpow2.f32 %v1442_v54 }
 0xc90   :  { %1777 = vtanh.f32 %v1099_v57  ;;  %v1297_v57 = vld [vmem:[%s2153_s4 + $0x8] sm:$0xff] }
 0xc91   :  { %1779 = vtanh.f32 %v1101_v58  ;;  %v1298_v58 = vld [vmem:[%s2153_s4 + $0x10] sm:$0xff] }
 0xc98   :  { %v1774_v59 = vpop.eup %1773 }
 0xc99   :  { %v1776_v60 = vpop.eup %1775  ;;  %v1108_v61 = vadd.f32 1.0, %v1774_v59  ;;  %v1874_v59 = vmov 0.0|0.0  }
 0xc9a   :  { %v1109_v62 = vadd.f32 1.0, %v1776_v60  ;;  %v1778_v63 = vpop.eup %1777  ;;  %1608 = vmatprep.subr.bf16.mxu1 %v1874_v59 }
 0xc9b   :  { %1781 = vrcp.f32 %v1108_v61  ;;  %v1780_v8 = vpop.eup %1779  ;;  %v1299_v61 = vld [vmem:[%s2153_s4 + $0x18] sm:$0xff] }
 0xc9c   :  { %1783 = vrcp.f32 %v1109_v62  ;;  %v1612_v62 = vpack.c.bf16 %v1299_v61, %v1298_v58 }
 0xc9d   :  { %1785 = vpow2.f32 %v1443_v28 }
 0xc9e   :  { %1787 = vpow2.f32 %v1444_v5 }
 0xca5   :  { %v1782_v2 = vpop.eup %1781 }
 0xca6   :  { %v1784_v15 = vpop.eup %1783  ;;  %v1136_v17 = vmul.f32 %v1782_v2, %v1778_v63  ;;  %v1134_v23 = vmul.f32 %v1782_v2, %v1130_v1  ;;  %v1300_v63 = vld [vmem:[%s2153_s4 + $0x20] sm:$0xff]  ;;  %v1302_v2 = vld [vmem:[%s2153_s4 + $0x30] sm:$0xff] }
 0xca7   :  { %v1137_v24 = vmul.f32 %v1784_v15, %v1780_v8  ;;  %v1135_v3 = vmul.f32 %v1784_v15, %v1131_v9  ;;  %v1786_v6 = vpop.eup %1785  ;;  %v1301_v8 = vld [vmem:[%s2153_s4 + $0x28] sm:$0xff]  ;;  %v1618_v9 = vpack.c.bf16 %v1303_v0, %v1302_v2 }
 0xca8   :  { %1140 = vrot.lane.b32.xlu0 %v1136_v17, %s1873_s3  ;;  %v1788_v7 = vpop.eup %1787  ;;  %v1122_v10 = vadd.f32 1.0, %v1786_v6  ;;  %v1615_v1 = vpack.c.bf16 %v1301_v8, %v1300_v63 }
 0xca9   :  { %1142 = vrot.lane.b32.xlu1 %v1137_v24, %s1873_s3  ;;  %v1123_v11 = vadd.f32 1.0, %v1788_v7 }
 0xcaa   :  { %1789 = vrcp.f32 %v1122_v10 }
 0xcab   :  { %1791 = vrcp.f32 %v1123_v11 }
 0xcb4   :  { %v1790_v18 = vpop.eup %1789 }
 0xcb5   :  { %v1792_v19 = vpop.eup %1791 }
 0xd1a   :  { %v1141_v12 = vpop.permute.xlu0 %1140 }
 0xd1b   :  { %v1143_v13 = vpop.permute.xlu1 %1142  ;;  %v1146_v14 = vadd.f32 %v1141_v12, %v1134_v23 }
 0xd1c   :  { %v1147_v16 = vadd.f32 %v1143_v13, %v1135_v3 }
 0xd1d   :  { %1793 = vtanh.f32 %v1146_v14  ;;  %v1274_v48 = vrot.slane %v1146_v14, 7 }
 0xd1e   :  { %1795 = vtanh.f32 %v1147_v16  ;;  %v1275_v52 = vrot.slane %v1147_v16, 7 }
 0xd27   :  { %v1794_v20 = vpop.eup %1793 }
 0xd28   :  { %v1796_v21 = vpop.eup %1795  ;;  %v1150_v22 = vmul.f32 %v1794_v20, %v1790_v18 }
 0xd29   :  { %v1151_v25 = vmul.f32 %v1796_v21, %v1792_v19 }
 0xd2a   :  { %v1154_v26 = vrot.slane %v1150_v22, 6 }
 0xd2b   :  { %v1155_v27 = vrot.slane %v1151_v25, 5  ;;  %v1450_v25 = vld [vmem:[%s2154_s5] ss:$0 sm:$0xff] }
 0xd2d   :  { %v1156_v29 = vsel %vm294_vm2, %v1155_v27, %v1154_v26 }
 0xd2e   :  { %1157 = vrot.lane.b32.xlu0 %v1156_v29, %s1873_s3 }
 0xda0   :  { %v1158_v4 = vpop.permute.xlu0 %1157 }
 0xda1   :  { %1445 = vmatmul.mubr.msk.f32.vlgmr.msra.gmra.mrb[10].mxu0 %vm160_vm3, %v1158_v4 }
 0xe74   :  { %v1227_v30 = vpop.f32.mrb[10].mxu0 }
 0xe75   :  { %v1234_v31 = vrot.slane %v1227_v30, 1  ;;  %v1236_v32 = vrot.slane %v1227_v30, 2  ;;  %v1229_v33 = vpop.f32.mrb[11].mxu0 }
 0xe76   :  { %v1235_v40 = vrot.slane %v1229_v33, 1  ;;  %v1237_v41 = vrot.slane %v1229_v33, 2 }
 0xe77   :  { %v1242_v34 = vadd.f32 %v1234_v31, %v1986_v38  ;;  %v1244_v35 = vadd.f32 %v1236_v32, %v1988_v39 }
 0xe78   :  { %v1243_v42 = vadd.f32 %v1235_v40, %v1992_v49  ;;  %v1245_v43 = vadd.f32 %v1237_v41, %v1994_v50  ;;  %v1296_v50 = vld [vmem:[%s2153_s4] sm:$0xff] }
 0xe79   :  { %v1446_v36 = vmul.f32 -1.442695, %v1242_v34  ;;  %v1447_v37 = vmul.f32 -1.442695, %v1244_v35  ;;  %v1609_v60 = vpack.c.bf16 %v1297_v57, %v1296_v50 }
 0xe7a   :  { %v1448_v15 = vmul.f32 -1.442695, %v1243_v42  ;;  %v1449_v17 = vmul.f32 -1.442695, %v1245_v43 }
 0xe7b   :  { %1797 = vpow2.f32 %v1446_v36  ;;  %1610 = vmatpush3.bf16.msra.mxu1 %v1609_v60 }
 0xe7c   :  { %1799 = vpow2.f32 %v1447_v37  ;;  %1611 = vmatprep.subr.bf16.mxu1 %v1874_v59 }
 0xe7d   :  { %1801 = vtanh.f32 %v1243_v42 }
 0xe7e   :  { %1803 = vtanh.f32 %v1245_v43 }
 0xe7f   :  { %1613 = vmatpush3.bf16.msra.mxu1 %v1612_v62 }
 0xe80   :  { %1614 = vmatprep.subr.bf16.mxu1 %v1874_v59 }
 0xe83   :  { %1616 = vmatpush3.bf16.msra.mxu1 %v1615_v1 }
 0xe84   :  { %1617 = vmatprep.subr.bf16.mxu1 %v1874_v59 }
 0xe85   :  { %v1798_v44 = vpop.eup %1797 }
 0xe86   :  { %v1800_v45 = vpop.eup %1799  ;;  %v1252_v46 = vadd.f32 1.0, %v1798_v44 }
 0xe87   :  { %v1253_v47 = vadd.f32 1.0, %v1800_v45  ;;  %v1802_v38 = vpop.eup %1801  ;;  %1619 = vmatpush3.bf16.msra.mxu1 %v1618_v9 }
 0xe88   :  { %1805 = vrcp.f32 %v1252_v46  ;;  %v1804_v39 = vpop.eup %1803 }
 0xe89   :  { %1807 = vrcp.f32 %v1253_v47 }
 0xe8a   :  { %1809 = vpow2.f32 %v1448_v15 }
 0xe8b   :  { %1811 = vpow2.f32 %v1449_v17 }
 0xe92   :  { %v1806_v51 = vpop.eup %1805 }
 0xe93   :  { %v1808_v53 = vpop.eup %1807  ;;  %v1280_v54 = vmul.f32 %v1806_v51, %v1802_v38  ;;  %v1278_v55 = vmul.f32 %v1806_v51, %v1274_v48 }
 0xe94   :  { %v1281_v56 = vmul.f32 %v1808_v53, %v1804_v39  ;;  %v1279_v49 = vmul.f32 %v1808_v53, %v1275_v52  ;;  %v1810_v23 = vpop.eup %1809 }
 0xe95   :  { %1284 = vrot.lane.b32.xlu1 %v1280_v54, %s1873_s3  ;;  %v1812_v24 = vpop.eup %1811  ;;  %v1266_v3 = vadd.f32 1.0, %v1810_v23 }
 0xe96   :  { %1286 = vrot.lane.b32.xlu0 %v1281_v56, %s1873_s3  ;;  %v1267_v28 = vadd.f32 1.0, %v1812_v24 }
 0xe97   :  { %1813 = vrcp.f32 %v1266_v3 }
 0xe98   :  { %1815 = vrcp.f32 %v1267_v28 }
 0xea1   :  { %v1814_v11 = vpop.eup %1813 }
 0xea2   :  { %v1816_v12 = vpop.eup %1815 }
 0xf07   :  { %v1285_v5 = vpop.permute.xlu1 %1284 }
 0xf08   :  { %v1287_v6 = vpop.permute.xlu0 %1286  ;;  %v1290_v7 = vadd.f32 %v1285_v5, %v1278_v55 }
 0xf09   :  { %v1291_v10 = vadd.f32 %v1287_v6, %v1279_v49 }
 0xf0a   :  { %1817 = vtanh.f32 %v1290_v7 }
 0xf0b   :  { %1819 = vtanh.f32 %v1291_v10 }
 0xf14   :  { %v1818_v13 = vpop.eup %1817 }
 0xf15   :  { %v1820_v14 = vpop.eup %1819  ;;  %v1294_v16 = vmul.f32 %v1818_v13, %v1814_v11 }
 0xf16   :  { %v1295_v18 = vmul.f32 %v1820_v14, %v1816_v12 }
 0xf17   :  { %v1313_v19 = vrot.slane %v1294_v16, 7 }
 0xf18   :  { %v1314_v20 = vrot.slane %v1295_v18, 6 }
 0xf1a   :  { %v1315_v21 = vsel %vm294_vm2, %v1314_v20, %v1313_v19 }
 0xf1b   :  { %1316 = vrot.lane.b32.xlu1 %v1315_v21, %s1873_s3 }
 0xf8d   :  { %v1317_v22 = vpop.permute.xlu1 %1316 }
 0xf8e   :  { %1478 = vmatmul.mubr.msk.f32.vlgmr.msra.gmra.mrb[8].mxu1 %vm160_vm3, %v1317_v22 }
0x1061   :  { %v1386_v26 = vpop.f32.mrb[8].mxu1 }
0x1062   :  { %v1387_v27 = vadd.f32 %v1450_v25, %v1386_v26  ;;  %v1479_v29 = vpop.f32.mrb[9].mxu1 }
0x1064   :  { %1391 = vst.msk [vmem:[#allocation5] sm:$0x3] %vm1390_vm5, %v1387_v27 }
0x1065   :  { %1854 = shalt.err (!%p1851_p12)
}
0x1066   :  { %s1855_s13 = scalar_lea.hbm %s2155_s6, 32 }
0x1067   :  { %p1856_p13 = scmp.ne.s32.totalorder %s2155_s6, %s1855_s13  ;;  %p1859_p0 = scmp.lt.u32.totalorder %s1855_s13, %s2155_s6 }
0x1069   :  { %p1861_p1 = pnand %p1859_p0, %p1856_p13 }
0x106b   :  { %1864 = shalt.err (!%p1861_p1)
}
0x106c   :  { %1401 = dma.vmem_to_hbm [thread:$0]  %s1399_s10, 32, %s2155_s6, [#allocation4]  }
0x106d   :  { %1867 = dma.done.wait [#allocation4], 32  }
0x106e   :  { %1868 = vsyncadd [#allocation4], 4294967264 }
0x106f   :  { %1405 = vsyncpa [#allocation3], 1 }
0x1070   :  { %1406 = vsyncpa [#allocation4], 1 }

</bundles_post_ra>
